<compile_context>
chip_gen: v7x
topology: tpu7x:2x2x1
jax: 0.10.0
libtpu: 0.0.40
codegen_flags: <defaults>
</compile_context>

<pallas_src>
import math

import jax
import jax.numpy as jnp
from jax.experimental import pallas as pl
from jax.experimental.pallas import tpu as pltpu

_LANES = 128
_SUBLANES = 8


def _round_up(n, m):
    return (n + m - 1) // m * m


def _rnn_mlp_kernel(x_ref, w_in_ref, b_in_ref, w_rec_ref, b_rec_ref,
                    w_out_ref, b_out_ref, out_ref):
    # x:     (tile_n, n_inputs)
    # w_in:  (n_inputs, HID_PAD)   b_in:  (1, HID_PAD)
    # w_rec: (HID_PAD, HID_PAD)    b_rec: (1, HID_PAD)
    # w_out: (HID_PAD, OUT_PAD)    b_out: (1, OUT_PAD)
    # out:   (tile_n, OUT_PAD)
    h1 = jnp.dot(x_ref[...], w_in_ref[...],
                 preferred_element_type=jnp.float32) + b_in_ref[...]
    h2 = jnp.dot(h1, w_rec_ref[...],
                 preferred_element_type=jnp.float32) + b_rec_ref[...]
    a = jnp.tanh(h2)                                    # EUP slot; ~free vs the matmuls
    out_ref[...] = jnp.dot(a, w_out_ref[...],
                           preferred_element_type=jnp.float32) + b_out_ref[...]


def custom_rnn_model_2_forward(x, params, *, tile_n=512):
    """x: (N, n_inputs) float32 -> (N, n_outputs) float32."""
    n, n_inputs = x.shape
    n_neurons = params["w_rec"].shape[0]
    n_outputs = params["w_out"].shape[0]

    hid_p = _round_up(n_neurons, _LANES)
    out_p = _round_up(n_outputs, _LANES)
    f32 = jnp.float32

    # --- wrapper glue (plain JAX, O(weights) one-time): transpose + lane-pad ---
    w_in_pad = jnp.zeros((n_inputs, hid_p), f32).at[:, :n_neurons].set(params["w_in"].T)
    b_in_pad = jnp.zeros((1, hid_p), f32).at[0, :n_neurons].set(params["b_in"])
    w_rec_pad = jnp.zeros((hid_p, hid_p), f32).at[:n_neurons, :n_neurons].set(params["w_rec"].T)
    b_rec_pad = jnp.zeros((1, hid_p), f32).at[0, :n_neurons].set(params["b_rec"])
    w_out_pad = jnp.zeros((hid_p, out_p), f32).at[:n_neurons, :n_outputs].set(params["w_out"].T)
    b_out_pad = jnp.zeros((1, out_p), f32).at[0, :n_outputs].set(params["b_out"])

    # --- row tiling: pad N so the grid is exact; tile size bounded & sublane-aligned ---
    n8 = _round_up(n, _SUBLANES)
    tile = _round_up(min(tile_n, n8), _SUBLANES)
    n_pad = _round_up(n8, tile)
    x_pad = x if n_pad == n else jnp.zeros((n_pad, n_inputs), x.dtype).at[:n].set(x)
    grid = (n_pad // tile,)

    flops = 2 * n_pad * (n_inputs * hid_p + hid_p * hid_p + hid_p * out_p)
    transcendentals = n_pad * hid_p
    bytes_accessed = 4 * (
        n_pad * n_inputs + n_pad * out_p
        + n_inputs * hid_p + hid_p * hid_p + hid_p * out_p + 2 * hid_p + out_p
    )

    out_padded = pl.pallas_call(
        _rnn_mlp_kernel,
        out_shape=jax.ShapeDtypeStruct((n_pad, out_p), f32),
        grid=grid,
        in_specs=[
            pl.BlockSpec((tile, n_inputs), lambda i: (i, 0)),    # x: tiled over samples
            pl.BlockSpec((n_inputs, hid_p), lambda i: (0, 0)),   # weights stay resident
            pl.BlockSpec((1, hid_p), lambda i: (0, 0)),
            pl.BlockSpec((hid_p, hid_p), lambda i: (0, 0)),
            pl.BlockSpec((1, hid_p), lambda i: (0, 0)),
            pl.BlockSpec((hid_p, out_p), lambda i: (0, 0)),
            pl.BlockSpec((1, out_p), lambda i: (0, 0)),
        ],
        out_specs=pl.BlockSpec((tile, out_p), lambda i: (i, 0)),
        compiler_params=pltpu.CompilerParams(
            dimension_semantics=("parallel",),
        ),
        cost_estimate=pl.CostEstimate(
            flops=flops,
            transcendentals=transcendentals,
            bytes_accessed=bytes_accessed,
        ),
    )(x_pad, w_in_pad, b_in_pad, w_rec_pad, b_rec_pad, w_out_pad, b_out_pad)

    return out_padded[:n, :n_outputs]


def init_params(key, n_inputs, n_neurons, n_outputs):
    """Deterministic synthetic init mirroring the PyTorch module's Linear layers."""
    k = jax.random.split(key, 6)
    s_in = 1.0 / math.sqrt(n_inputs)     # torch.nn.Linear default init range
    s_hid = 1.0 / math.sqrt(n_neurons)
    w_in = jax.random.uniform(k[0], (n_neurons, n_inputs), jnp.float32, -s_in, s_in)
    b_in = jax.random.uniform(k[1], (n_neurons,), jnp.float32, -s_in, s_in)
    w_rec = jax.random.uniform(k[2], (n_neurons, n_neurons), jnp.float32, -s_hid, s_hid)
    b_rec = jax.random.uniform(k[3], (n_neurons,), jnp.float32, -s_hid, s_hid)
    w_out = jax.random.uniform(k[4], (n_outputs, n_neurons), jnp.float32, -s_hid, s_hid)
    b_out = jax.random.uniform(k[5], (n_outputs,), jnp.float32, -s_hid, s_hid)
    return dict(w_in=w_in, b_in=b_in, w_rec=w_rec, b_rec=b_rec,
                w_out=w_out, b_out=b_out)


def _reference_forward(x, p):
    """Pure-JAX reference reproducing the PyTorch forward op-by-op (full f32 matmuls)."""
    hi = jax.lax.Precision.HIGHEST
    h1 = jnp.dot(x, p["w_in"].T, precision=hi) + p["b_in"]
    h2 = jnp.dot(h1, p["w_rec"].T, precision=hi) + p["b_rec"]
    a = jnp.tanh(h2)
    return jnp.dot(a, p["w_out"].T, precision=hi) + p["b_out"]


if __name__ == "__main__":
    # Small shapes consistent with the module's forward: x is (n_samples, n_inputs).
    n_samples, n_inputs, n_neurons, n_outputs = 24, 16, 32, 8

    key = jax.random.PRNGKey(0)
    k_x, k_p = jax.random.split(key)
    params = init_params(k_p, n_inputs, n_neurons, n_outputs)
    x = jax.random.normal(k_x, (n_samples, n_inputs), jnp.float32)

    # tile_n=8 -> 3 grid steps even at this tiny demo size (exercises the pipeline).
    fwd = jax.jit(lambda xx: custom_rnn_model_2_forward(xx, params, tile_n=8))
    out = jax.block_until_ready(fwd(x))

    ref = _reference_forward(x, params)
    assert out.shape == (n_samples, n_outputs)
    # Tolerance covers MXU f32-pass rounding differences between XLA and Mosaic paths.
    assert jnp.allclose(out, ref, atol=1e-3, rtol=1e-3), float(jnp.max(jnp.abs(out - ref)))

    print("KERNEL_OK")
</pallas_src>

<mosaic_0001>
module attributes {stable_mosaic.version = 11 : i64} {
  func.func @_rnn_mlp_kernel(%arg0: i32, %arg1: memref<8x16xf32, #tpu.memory_space<vmem>>, %arg2: memref<16x128xf32, #tpu.memory_space<vmem>>, %arg3: memref<1x128xf32, #tpu.memory_space<vmem>>, %arg4: memref<128x128xf32, #tpu.memory_space<vmem>>, %arg5: memref<1x128xf32, #tpu.memory_space<vmem>>, %arg6: memref<128x128xf32, #tpu.memory_space<vmem>>, %arg7: memref<1x128xf32, #tpu.memory_space<vmem>>, %arg8: memref<8x128xf32, #tpu.memory_space<vmem>>) attributes {dimension_semantics = [#tpu.dimension_semantics<parallel>], iteration_bounds = array<i64: 3>, scalar_prefetch = 0 : i64, scratch_operands = 0 : i64, tpu.core_type = #tpu.core_type<tc>, window_params = [{transform_indices = @transform_0, window_bounds = array<i64: 8, 16>}, {pipeline_mode = #tpu.pipeline_mode<synchronous>, transform_indices = @transform_1, window_bounds = array<i64: 16, 128>}, {pipeline_mode = #tpu.pipeline_mode<synchronous>, transform_indices = @transform_2, window_bounds = array<i64: 1, 128>}, {pipeline_mode = #tpu.pipeline_mode<synchronous>, transform_indices = @transform_3, window_bounds = array<i64: 128, 128>}, {pipeline_mode = #tpu.pipeline_mode<synchronous>, transform_indices = @transform_4, window_bounds = array<i64: 1, 128>}, {pipeline_mode = #tpu.pipeline_mode<synchronous>, transform_indices = @transform_5, window_bounds = array<i64: 128, 128>}, {pipeline_mode = #tpu.pipeline_mode<synchronous>, transform_indices = @transform_6, window_bounds = array<i64: 1, 128>}, {transform_indices = @transform_7, window_bounds = array<i64: 8, 128>}]} {
    %c0 = arith.constant 0 : index
    %c0_0 = arith.constant 0 : index
    %0 = vector.load %arg1[%c0, %c0_0] : memref<8x16xf32, #tpu.memory_space<vmem>>, vector<8x16xf32>
    %c0_1 = arith.constant 0 : index
    %c0_2 = arith.constant 0 : index
    %1 = vector.load %arg2[%c0_1, %c0_2] : memref<16x128xf32, #tpu.memory_space<vmem>>, vector<16x128xf32>
    %cst = arith.constant dense<0.000000e+00> : vector<8x128xf32>
    %2 = tpu.matmul %0, %1, %cst {dimension_numbers = #tpu.dot_dimension_numbers<[1], [0], [0], [1], [0, 0, 1, 1], [], []>} : vector<8x16xf32>, vector<16x128xf32>, vector<8x128xf32> -> vector<8x128xf32>
    %c0_3 = arith.constant 0 : index
    %c0_4 = arith.constant 0 : index
    %3 = vector.load %arg3[%c0_3, %c0_4] : memref<1x128xf32, #tpu.memory_space<vmem>>, vector<1x128xf32>
    %4 = vector.broadcast %3 : vector<1x128xf32> to vector<8x128xf32>
    %5 = arith.addf %2, %4 : vector<8x128xf32>
    %c0_5 = arith.constant 0 : index
    %c0_6 = arith.constant 0 : index
    %6 = vector.load %arg4[%c0_5, %c0_6] : memref<128x128xf32, #tpu.memory_space<vmem>>, vector<128x128xf32>
    %cst_7 = arith.constant dense<0.000000e+00> : vector<8x128xf32>
    %7 = tpu.matmul %5, %6, %cst_7 {dimension_numbers = #tpu.dot_dimension_numbers<[1], [0], [0], [1], [0, 0, 1, 1], [], []>} : vector<8x128xf32>, vector<128x128xf32>, vector<8x128xf32> -> vector<8x128xf32>
    %c0_8 = arith.constant 0 : index
    %c0_9 = arith.constant 0 : index
    %8 = vector.load %arg5[%c0_8, %c0_9] : memref<1x128xf32, #tpu.memory_space<vmem>>, vector<1x128xf32>
    %9 = vector.broadcast %8 : vector<1x128xf32> to vector<8x128xf32>
    %10 = arith.addf %7, %9 : vector<8x128xf32>
    %11 = math.tanh %10 : vector<8x128xf32>
    %c0_10 = arith.constant 0 : index
    %c0_11 = arith.constant 0 : index
    %12 = vector.load %arg6[%c0_10, %c0_11] : memref<128x128xf32, #tpu.memory_space<vmem>>, vector<128x128xf32>
    %cst_12 = arith.constant dense<0.000000e+00> : vector<8x128xf32>
    %13 = tpu.matmul %11, %12, %cst_12 {dimension_numbers = #tpu.dot_dimension_numbers<[1], [0], [0], [1], [0, 0, 1, 1], [], []>} : vector<8x128xf32>, vector<128x128xf32>, vector<8x128xf32> -> vector<8x128xf32>
    %c0_13 = arith.constant 0 : index
    %c0_14 = arith.constant 0 : index
    %14 = vector.load %arg7[%c0_13, %c0_14] : memref<1x128xf32, #tpu.memory_space<vmem>>, vector<1x128xf32>
    %15 = vector.broadcast %14 : vector<1x128xf32> to vector<8x128xf32>
    %16 = arith.addf %13, %15 : vector<8x128xf32>
    %c0_15 = arith.constant 0 : index
    %c0_16 = arith.constant 0 : index
    %17 = vector.load %arg8[%c0_15, %c0_16] : memref<8x128xf32, #tpu.memory_space<vmem>>, vector<8x128xf32>
    tpu.vector_store %arg8[%c0_15, %c0_16], %16 {strides = array<i32>} : memref<8x128xf32, #tpu.memory_space<vmem>>, vector<8x128xf32>,
    return
  }
  func.func @transform_0(%arg0: i32) -> (i32, i32) {
    %c0_i32 = arith.constant 0 : i32
    %c0_i32_0 = arith.constant 0 : i32
    return %arg0, %c0_i32 : i32, i32
  }
  func.func @transform_1(%arg0: i32) -> (i32, i32) {
    %c0_i32 = arith.constant 0 : i32
    %c0_i32_0 = arith.constant 0 : i32
    %c0_i32_1 = arith.constant 0 : i32
    return %c0_i32, %c0_i32_0 : i32, i32
  }
  func.func @transform_2(%arg0: i32) -> (i32, i32) {
    %c0_i32 = arith.constant 0 : i32
    %c0_i32_0 = arith.constant 0 : i32
    %c0_i32_1 = arith.constant 0 : i32
    return %c0_i32, %c0_i32_0 : i32, i32
  }
  func.func @transform_3(%arg0: i32) -> (i32, i32) {
    %c0_i32 = arith.constant 0 : i32
    %c0_i32_0 = arith.constant 0 : i32
    %c0_i32_1 = arith.constant 0 : i32
    return %c0_i32, %c0_i32_0 : i32, i32
  }
  func.func @transform_4(%arg0: i32) -> (i32, i32) {
    %c0_i32 = arith.constant 0 : i32
    %c0_i32_0 = arith.constant 0 : i32
    %c0_i32_1 = arith.constant 0 : i32
    return %c0_i32, %c0_i32_0 : i32, i32
  }
  func.func @transform_5(%arg0: i32) -> (i32, i32) {
    %c0_i32 = arith.constant 0 : i32
    %c0_i32_0 = arith.constant 0 : i32
    %c0_i32_1 = arith.constant 0 : i32
    return %c0_i32, %c0_i32_0 : i32, i32
  }
  func.func @transform_6(%arg0: i32) -> (i32, i32) {
    %c0_i32 = arith.constant 0 : i32
    %c0_i32_0 = arith.constant 0 : i32
    %c0_i32_1 = arith.constant 0 : i32
    return %c0_i32, %c0_i32_0 : i32, i32
  }
  func.func @transform_7(%arg0: i32) -> (i32, i32) {
    %c0_i32 = arith.constant 0 : i32
    %c0_i32_0 = arith.constant 0 : i32
    return %arg0, %c0_i32 : i32, i32
  }
}

</mosaic_0001>

<bundles_post_ra>
// kernel: _lambda_.1
= control target key start
LH: loop header
LB: loop body
LE: loop exit
PB: predicated region body
PF: predicated region fallthrough
CT: control target
= control target key end

     0   :  { %12 = vsyncpa [#allocation3], 0  ;;  %s918_s24 = smov 0   ;;  %s1064_s0 = inlined_call_operand.vmem [shape: f32[24,16], index: 0, kind: input, shape index: {}]   ;;  %s1065_s1 = inlined_call_operand.vmem [shape: f32[16,128], index: 1, kind: input, shape index: {}]   ;;  %s1066_s2 = inlined_call_operand.vmem [shape: f32[1,128], index: 2, kind: input, shape index: {}]   ;;  %s1067_s3 = inlined_call_operand.hbm [shape: f32[128,128], index: 3, kind: input, shape index: {}]   ;;  %s1068_s4 = inlined_call_operand.vmem [shape: f32[1,128], index: 4, kind: input, shape index: {}]   ;;  %s1069_s5 = inlined_call_operand.vmem [shape: f32[128,128], index: 5, kind: input, shape index: {}]   ;;  %s1070_s6 = inlined_call_operand.vmem [shape: f32[1,128], index: 6, kind: input, shape index: {}]   ;;  %s1071_s7 = inlined_call_operand.vmem [shape: f32[24,128], index: 7, kind: output, shape index: {}]  }
   0x1 LB: > { %s924_s25 = sadd.s32 4294967295, %s870_s24   ;;  %p628_p0 = scmp.ge.s32.totalorder %s870_s24, 1  ;;  %s870_s24 = sphi %s918_s24, %s18_s24  }
   0x2   : > { %p201_p1 = scmp.lt.s32.totalorder %s870_s24, 4  ;;  %s872_s26 = smov [#allocation2]  }
   0x3   : > { %s219_s27 = sshll.u32 %s872_s26, 4  ;;  %p1072_p3 = scmp.eq.s32.totalorder %s924_s25, 0  ;;  %s220_s27 = int_to_ptr.vmem [resolvable:$true] %s219_s27 }
   0x4   : > { %p928_p2 = pnand %p628_p0, %p201_p1  ;;  %s832_s9 = scalar_lea.hbm %s1067_s3, 2048 }
   0x5   : > { %p833_p6 = scmp.ne.s32.totalorder %s1067_s3, %s832_s9  ;;  %p839_p10 = scmp.lt.u32.totalorder %s832_s9, %s1067_s3 }
   0x6   : > { %s1074_s28 = scalar_select %p928_p2, 1, 0 }
   0x7   : > { %p810_p4 = pneg %p928_p2 }
   0x9   : > { %p937_p5 = pnand %p1072_p3, %p810_p4 }
   0xb   : > { %p834_p7 = pneg %p937_p5 }
   0xd   : > { %p835_p8 = pnand %p834_p7, %p833_p6 }
   0xf   : > { %p836_p9 = pneg %p835_p8 }
  0x11   : > { %p841_p11 = pnand %p839_p10, %p836_p9 }
  0x13   : > { %844 = shalt.err (!%p841_p11)
}
  0x14   : > { %s845_s14 = scalar_lea.vmem %s220_s27, 2048  ;;  %p853_p1 = scmp.lt.s32.totalorder %s220_s27, %s220_s27 }
  0x15   : > { %p846_p12 = scmp.ne.s32.totalorder %s220_s27, %s845_s14  ;;  %p854_p4 = scmp.lt.s32.totalorder %s845_s14, %s845_s14 }
  0x17   : > { %p848_p13 = pnand %p846_p12, %p834_p7  ;;  %p855_p3 = por %p854_p4, %p853_p1 }
  0x19   : > { %p849_p0 = pneg %p848_p13 }
  0x1b   : > { %p856_p2 = pnand %p855_p3, %p849_p0 }
  0x1d   : > { %859 = shalt.err (!%p856_p2)
}
  0x1e   : > { %s873_s15 = smov 128   ;;  %s874_s16 = smov 8  }
  0x1f   : > { %813 = dma.hbm_to_vmem [thread:$0]  (!%p937_p5), %s1067_s3, 2048, %s220_s27, [#allocation3], %s873_s15, %s873_s15, %s874_s16  }
  0x20   : > { %p1076_p6 = scmp.ne.s32.totalorder %s1074_s28, 0 }
  0x21   : > { %p1077_p8 = scmp.eq.s32.totalorder (!%p1076_p6), %s924_s25, 0 }
  0x22   : > { %251 = sbr.rel (%p1076_p6) target bundleno = 702 (0x2be), region = 48 }
  0x29   : > { %865 = dma.done.wait (%p1077_p8), [#allocation3], 2048   ;;  %p1078_p7 = pmov %p1077_p8 }
  0x2a   : > { %p281_p2 = scmp.lt.s32.totalorder %s924_s25, 2  ;;  %v875_v0 = vmov 0.0|0.0   ;;  %vm876_vm0 = vmmov 0   ;;  %v877_v1 = vmov 0.0   ;;  %v290_v2 = vld [vmem:[%s1065_s1] sm:$0xff]  ;;  %v291_v3 = vld [vmem:[%s1065_s1 + $0x8] sm:$0xff] }
  0x2b   : > { %867 = vsyncadd (%p1078_p7), [#allocation3], 4294965248  ;;  %755 = vmatprep.subr.bf16.mxu0 %v875_v0  ;;  %682 = vmatprep.mubr.msk.f32.mxu0 %vm876_vm0, %v877_v1  ;;  %v756_v4 = vpack.c.bf16 %v291_v3, %v290_v2  ;;  %v373_v5 = vld [vmem:[#allocation2] sm:$0xff]  ;;  %v374_v6 = vld [vmem:[#allocation2 + $0x8] sm:$0xff]  ;;  %vm299_vm1 = vcmask 130048  }
  0x2c   : > { %s1080_s25 = smov (!%p281_p2, %s924_s25), 2  ;;  %758 = vmatprep.subr.bf16.mxu1 %v875_v0  ;;  %717 = vmatprep.mubr.msk.f32.mxu1 %vm876_vm0, %v877_v1  ;;  %v375_v7 = vld [vmem:[#allocation2 + $0x10] sm:$0xff]  ;;  %v759_v8 = vpack.c.bf16 %v374_v6, %v373_v5  ;;  %v376_v9 = vld [vmem:[#allocation2 + $0x18] sm:$0xff]  ;;  %v377_v12 = vld [vmem:[#allocation2 + $0x20] sm:$0xff] }
  0x2d   : > { %s633_s19 = sshll.u32 %s1080_s25, 3  ;;  %757 = vmatpush3.bf16.msra.mxu0 %v756_v4  ;;  %v762_v11 = vpack.c.bf16 %v376_v9, %v375_v7  ;;  %v378_v13 = vld [vmem:[#allocation2 + $0x28] sm:$0xff]  ;;  %v379_v15 = vld [vmem:[#allocation2 + $0x30] sm:$0xff]  ;;  %v380_v16 = vld [vmem:[#allocation2 + $0x38] sm:$0xff] }
  0x2e   : > { %s284_s28 = scalar_lea.vmem %s1064_s0, %s633_s19  ;;  %760 = vmatpush3.bf16.msra.mxu1 %v759_v8  ;;  %782 = vmatprep.subr.bf16.mxu0 %v875_v0  ;;  %v765_v14 = vpack.c.bf16 %v378_v13, %v377_v12  ;;  %v768_v17 = vpack.c.bf16 %v380_v16, %v379_v15  ;;  %v381_v18 = vld [vmem:[#allocation2 + $0x40] sm:$0xff]  ;;  %v382_v19 = vld [vmem:[#allocation2 + $0x48] sm:$0xff]  ;;  %v383_v21 = vld [vmem:[#allocation2 + $0x50] sm:$0xff]  ;;  %s288_s29 = scalar_lea.vmem %s1071_s7, %s633_s19 }
  0x2f   : > { %v289_v10 = vld [vmem:[%s284_s28] sm:$0xff]  ;;  %761 = vmatprep.subr.bf16.mxu1 %v875_v0  ;;  %v771_v20 = vpack.c.bf16 %v382_v19, %v381_v18  ;;  %v384_v22 = vld [vmem:[#allocation2 + $0x58] sm:$0xff]  ;;  %v386_v25 = vld [vmem:[#allocation2 + $0x68] sm:$0xff] }
  0x30   : > { %683 = vmatmul.mubr.msk.f32.vlgmr.msra.gmra.mrb[0].mxu0 %vm299_vm1, %v289_v10  ;;  %v774_v23 = vpack.c.bf16 %v384_v22, %v383_v21  ;;  %v385_v24 = vld [vmem:[#allocation2 + $0x60] sm:$0xff]  ;;  %v387_v27 = vld [vmem:[#allocation2 + $0x70] sm:$0xff]  ;;  %v388_v28 = vld [vmem:[#allocation2 + $0x78] sm:$0xff] }
  0x31   : > { %752 = vmatprep.mubr.msk.f32.mxu0 %vm876_vm0, %v877_v1  ;;  %v777_v26 = vpack.c.bf16 %v386_v25, %v385_v24  ;;  %v780_v29 = vpack.c.bf16 %v388_v28, %v387_v27  ;;  %v467_v30 = vld [vmem:[%s1069_s5] sm:$0xff]  ;;  %v468_v31 = vld [vmem:[%s1069_s5 + $0x8] sm:$0xff]  ;;  %v469_v32 = vld [vmem:[%s1069_s5 + $0x10] sm:$0xff] }
  0x32   : > { %763 = vmatpush3.bf16.msra.mxu1 %v762_v11  ;;  %v783_v33 = vpack.c.bf16 %v468_v31, %v467_v30  ;;  %v470_v34 = vld [vmem:[%s1069_s5 + $0x18] sm:$0xff]  ;;  %v471_v36 = vld [vmem:[%s1069_s5 + $0x20] sm:$0xff]  ;;  %v472_v37 = vld [vmem:[%s1069_s5 + $0x28] sm:$0xff] }
  0x33   : > { %764 = vmatprep.subr.bf16.mxu1 %v875_v0  ;;  %v786_v35 = vpack.c.bf16 %v470_v34, %v469_v32  ;;  %v789_v38 = vpack.c.bf16 %v472_v37, %v471_v36  ;;  %v473_v39 = vld [vmem:[%s1069_s5 + $0x30] sm:$0xff]  ;;  %v474_v40 = vld [vmem:[%s1069_s5 + $0x38] sm:$0xff]  ;;  %v475_v42 = vld [vmem:[%s1069_s5 + $0x40] sm:$0xff] }
  0x34   : > { %784 = vmatpush3.bf16.msra.mxu0 %v783_v33  ;;  %v792_v41 = vpack.c.bf16 %v474_v40, %v473_v39  ;;  %v476_v43 = vld [vmem:[%s1069_s5 + $0x48] sm:$0xff]  ;;  %v635_v45 = vld [vmem:[%s1066_s2] ss:$0 sm:$0xff]  ;;  %v477_v49 = vld [vmem:[%s1069_s5 + $0x50] sm:$0xff] }
  0x35   : > { %785 = vmatprep.subr.bf16.mxu0 %v875_v0  ;;  %v795_v44 = vpack.c.bf16 %v476_v43, %v475_v42  ;;  %v478_v50 = vld [vmem:[%s1069_s5 + $0x58] sm:$0xff]  ;;  %v479_v52 = vld [vmem:[%s1069_s5 + $0x60] sm:$0xff]  ;;  %v480_v53 = vld [vmem:[%s1069_s5 + $0x68] sm:$0xff] }
  0x36   : > { %766 = vmatpush3.bf16.msra.mxu1 %v765_v14  ;;  %v798_v51 = vpack.c.bf16 %v478_v50, %v477_v49  ;;  %v801_v54 = vpack.c.bf16 %v480_v53, %v479_v52  ;;  %v481_v55 = vld [vmem:[%s1069_s5 + $0x70] sm:$0xff]  ;;  %v482_v56 = vld [vmem:[%s1069_s5 + $0x78] sm:$0xff]  ;;  %v637_v58 = vld [vmem:[%s1068_s4] ss:$0 sm:$0xff] }
  0x37   : > { %767 = vmatprep.subr.bf16.mxu1 %v875_v0  ;;  %v804_v57 = vpack.c.bf16 %v482_v56, %v481_v55  ;;  %v638_v63 = vld [vmem:[%s1070_s6] ss:$0 sm:$0xff] }
  0x38   : > { %787 = vmatpush3.bf16.msra.mxu0 %v786_v35 }
  0x39   : > { %788 = vmatprep.subr.bf16.mxu0 %v875_v0 }
  0x3a   : > { %769 = vmatpush3.bf16.msra.mxu1 %v768_v17 }
  0x3b   : > { %770 = vmatprep.subr.bf16.mxu1 %v875_v0 }
  0x3c   : > { %790 = vmatpush3.bf16.msra.mxu0 %v789_v38 }
  0x3d   : > { %791 = vmatprep.subr.bf16.mxu0 %v875_v0 }
  0x3e   : > { %772 = vmatpush3.bf16.msra.mxu1 %v771_v20 }
  0x3f   : > { %773 = vmatprep.subr.bf16.mxu1 %v875_v0 }
  0x40   : > { %793 = vmatpush3.bf16.msra.mxu0 %v792_v41 }
  0x41   : > { %794 = vmatprep.subr.bf16.mxu0 %v875_v0 }
  0x42   : > { %775 = vmatpush3.bf16.msra.mxu1 %v774_v23 }
  0x43   : > { %776 = vmatprep.subr.bf16.mxu1 %v875_v0 }
  0x44   : > { %796 = vmatpush3.bf16.msra.mxu0 %v795_v44 }
  0x45   : > { %797 = vmatprep.subr.bf16.mxu0 %v875_v0 }
  0x46   : > { %778 = vmatpush3.bf16.msra.mxu1 %v777_v26 }
  0x47   : > { %779 = vmatprep.subr.bf16.mxu1 %v875_v0 }
  0x48   : > { %799 = vmatpush3.bf16.msra.mxu0 %v798_v51 }
  0x49   : > { %800 = vmatprep.subr.bf16.mxu0 %v875_v0 }
  0x4a   : > { %781 = vmatpush3.bf16.msra.mxu1 %v780_v29 }
  0x4c   : > { %802 = vmatpush3.bf16.msra.mxu0 %v801_v54 }
  0x4d   : > { %803 = vmatprep.subr.bf16.mxu0 %v875_v0 }
  0x50   : > { %805 = vmatpush3.bf16.msra.mxu0 %v804_v57 }
 0x103   : > { %v369_v46 = vpop.f32.mrb[0].mxu0 }
 0x104   : > { %v370_v47 = vadd.f32 %v635_v45, %v369_v46  ;;  %v684_v48 = vpop.f32.mrb[1].mxu0 }
 0x106   : > { %718 = vmatmul.mubr.f32.vlgmr.msra.gmra.mrb[0].mxu1 %v370_v47 }
 0x1d9   : > { %v462_v59 = vpop.f32.mrb[0].mxu1 }
 0x1da   : > { %v463_v60 = vadd.f32 %v637_v58, %v462_v59  ;;  %v719_v61 = vpop.f32.mrb[1].mxu1 }
 0x1dc   : > { %830 = vtanh.f32 %v463_v60 }
 0x1e6   : > { %v831_v62 = vpop.eup %830 }
 0x1e7   : > { %753 = vmatmul.mubr.f32.vlgmr.msra.gmra.mrb[2].mxu0 %v831_v62 }
 0x2ba   : > { %v556_v0 = vpop.f32.mrb[2].mxu0 }
 0x2bb   : > { %v557_v1 = vadd.f32 %v638_v63, %v556_v0  ;;  %v754_v2 = vpop.f32.mrb[3].mxu0 }
 0x2bd   : > { %560 = vst [vmem:[%s288_s29] sm:$0xff] %v557_v1 }
 0x2be PF: > { %s18_s24 = sadd.s32 1, %s870_s24  }
 0x2bf   : > { %p15_p3 = scmp.ge.s32.totalorder %s18_s24, 5  }
 0x2c1   :  { %17 = sbr.rel (!%p15_p3) target bundleno = 1 (0x1), region = 83 }
 0x2c8   :  { %580 = vsyncpa [#allocation3], 1 }
 0x2c9   :  { %582 = vsyncpa [#allocation3 + $0x1], 1 }

</bundles_post_ra>
